<compile_context>
chip_gen: v6e
topology: v6e:2x2x1
jax: 0.10.0
libtpu: 0.0.40
codegen_flags: <defaults>
</compile_context>

<pallas_src>
import jax
import jax.numpy as jnp
from jax.experimental import pallas as pl
from jax.experimental.pallas import tpu as pltpu

IN1, OUT1 = 10, 5   # layer1: Linear(10 -> 5)
IN2, OUT2 = 5, 2    # layer2: Linear(5 -> 2)
PACK = 8            # batch rows packed per sublane-row (fills sublanes; keeps
                    # the wrapper reshapes free / bitcast-equivalent)


def _round_up(n, m):
    return ((n + m - 1) // m) * m


def mlp_kernel(w1_ref, b1_ref, w2_ref, b2_ref, x_ref, o_ref):
    """Fused packed-batch MLP tile (all MXU + a little VPU).

    x_ref : (tb8, PACK*IN1)   8 batch rows packed per row of the block
    w1_ref: (PACK*IN1, PACK*OUT1)  block-diagonal copies of w1.T
    b1_ref: (1, PACK*OUT1)
    w2_ref: (PACK*IN2, PACK*OUT2)  block-diagonal copies of w2.T
    b2_ref: (1, PACK*OUT2)
    o_ref : (tb8, PACK*OUT2)
    """
    x = x_ref[...]
    h = jnp.dot(x, w1_ref[...], preferred_element_type=jnp.float32)
    h = jnp.maximum(h + b1_ref[...], 0.0)                      # (tb8, 40)
    y = jnp.dot(h, w2_ref[...], preferred_element_type=jnp.float32)
    y = y + b2_ref[...]                                        # (tb8, 16)
    o_ref[...] = y.astype(o_ref.dtype)                         # single combined store


def simple_nn_forward(x, w1, b1, w2, b2, *, tile_b=32768):
    """x: [B, 10]; w1: [5, 10]; b1: [5]; w2: [2, 5]; b2: [2] (PyTorch layouts)."""
    B, in_features = x.shape
    assert in_features == IN1
    dtype = x.dtype

    b8 = pl.cdiv(B, PACK)                       # packed rows needed

    # Tile size in packed rows: multiple of 8 sublanes; cap at ~half the batch
    # so the grid has >= 2 steps when possible (v7x megacore sharding).
    tb8_req = max(8, _round_up(max(tile_b, PACK) // PACK, 8))
    tb8_cap = max(8, _round_up(pl.cdiv(b8, 2), 8))
    tb8 = min(tb8_req, tb8_cap)

    b8_pad = _round_up(b8, tb8)
    b_pad = b8_pad * PACK

    if b_pad != B:   # only touches HBM when B isn't already tile-aligned
        x = jnp.pad(x, ((0, b_pad - B), (0, 0)))
    # Free (bitcast) reshape: row-major [b_pad, 10] -> [b8_pad, 80].
    x_p = x.reshape(b8_pad, PACK * IN1)

    # Block-diagonal packed weights / tiled biases (O(100) elements, built once).
    eye = jnp.eye(PACK, dtype=dtype)
    w1_big = jnp.kron(eye, jnp.transpose(w1).astype(dtype))     # (80, 40)
    w2_big = jnp.kron(eye, jnp.transpose(w2).astype(dtype))     # (40, 16)
    b1_big = jnp.tile(b1.astype(dtype), PACK)[None, :]          # (1, 40)
    b2_big = jnp.tile(b2.astype(dtype), PACK)[None, :]          # (1, 16)

    grid = (b8_pad // tb8,)

    out_p = pl.pallas_call(
        mlp_kernel,
        out_shape=jax.ShapeDtypeStruct((b8_pad, PACK * OUT2), dtype),
        grid=grid,
        in_specs=[
            # Tiny parameter tables: full-array VMEM blocks, same block every
            # grid step (Pallas keeps them resident; MXU needs VMEM operands).
            pl.BlockSpec((PACK * IN1, PACK * OUT1), lambda i: (0, 0)),   # w1_big
            pl.BlockSpec((1, PACK * OUT1), lambda i: (0, 0)),            # b1_big
            pl.BlockSpec((PACK * IN2, PACK * OUT2), lambda i: (0, 0)),   # w2_big
            pl.BlockSpec((1, PACK * OUT2), lambda i: (0, 0)),            # b2_big
            # Activations: batch-tiled, auto double-buffered by Pallas.
            pl.BlockSpec((tb8, PACK * IN1), lambda i: (i, 0)),           # x_p
        ],
        out_specs=pl.BlockSpec((tb8, PACK * OUT2), lambda i: (i, 0)),
        compiler_params=pltpu.CompilerParams(
            dimension_semantics=("parallel",),       # megacore-shard batch axis
            vmem_limit_bytes=32 * 1024 * 1024,       # cover v5e's 16 MiB default
        ),
    )(w1_big, b1_big, w2_big, b2_big, x_p)

    # Free reshape back to [b_pad, 2]; drop any batch padding.
    return out_p.reshape(b_pad, OUT2)[:B]


def init_params(key):
    """Deterministic init matching nn.Linear shapes (uniform like PyTorch default)."""
    k1, k2, k3, k4 = jax.random.split(key, 4)
    bound1 = 1.0 / jnp.sqrt(IN1)
    bound2 = 1.0 / jnp.sqrt(IN2)
    w1 = jax.random.uniform(k1, (OUT1, IN1), jnp.float32, -bound1, bound1)
    b1 = jax.random.uniform(k2, (OUT1,), jnp.float32, -bound1, bound1)
    w2 = jax.random.uniform(k3, (OUT2, IN2), jnp.float32, -bound2, bound2)
    b2 = jax.random.uniform(k4, (OUT2,), jnp.float32, -bound2, bound2)
    return w1, b1, w2, b2


def _ref(x, w1, b1, w2, b2):
    h = jnp.maximum(
        jnp.dot(x, w1.T, precision=jax.lax.Precision.HIGHEST) + b1, 0.0)
    return jnp.dot(h, w2.T, precision=jax.lax.Precision.HIGHEST) + b2


if __name__ == "__main__":
    key = jax.random.PRNGKey(0)
    k_x, k_p, k_x2 = jax.random.split(key, 3)

    w1, b1, w2, b2 = init_params(k_p)

    # Small-batch check (single grid step, batch padded up to one packed tile).
    batch = 8
    x = jax.random.normal(k_x, (batch, IN1), jnp.float32)
    out = jax.block_until_ready(simple_nn_forward(x, w1, b1, w2, b2))
    assert out.shape == (batch, OUT2)
    assert jnp.allclose(out, _ref(x, w1, b1, w2, b2), atol=1e-4, rtol=1e-4)

    # Multi-tile check: exercises the batch grid (>=2 steps), pipelining, and
    # the non-multiple-of-PACK padding path.
    batch2 = 300
    x2 = jax.random.normal(k_x2, (batch2, IN1), jnp.float32)
    out2 = jax.block_until_ready(
        simple_nn_forward(x2, w1, b1, w2, b2, tile_b=1024))
    assert out2.shape == (batch2, OUT2)
    assert jnp.allclose(out2, _ref(x2, w1, b1, w2, b2), atol=1e-4, rtol=1e-4)

    print("KERNEL_OK")
</pallas_src>

<mosaic_0001>
module attributes {stable_mosaic.version = 11 : i64} {
  func.func @mlp_kernel(%arg0: i32, %arg1: memref<80x40xf32, #tpu.memory_space<vmem>>, %arg2: memref<1x40xf32, #tpu.memory_space<vmem>>, %arg3: memref<40x16xf32, #tpu.memory_space<vmem>>, %arg4: memref<1x16xf32, #tpu.memory_space<vmem>>, %arg5: memref<8x80xf32, #tpu.memory_space<vmem>>, %arg6: memref<8x16xf32, #tpu.memory_space<vmem>>) attributes {dimension_semantics = [#tpu.dimension_semantics<parallel>], iteration_bounds = array<i64: 1>, scalar_prefetch = 0 : i64, scratch_operands = 0 : i64, tpu.core_type = #tpu.core_type<tc>, window_params = [{pipeline_mode = #tpu.pipeline_mode<synchronous>, transform_indices = @transform_0, window_bounds = array<i64: 80, 40>}, {pipeline_mode = #tpu.pipeline_mode<synchronous>, transform_indices = @transform_1, window_bounds = array<i64: 1, 40>}, {pipeline_mode = #tpu.pipeline_mode<synchronous>, transform_indices = @transform_2, window_bounds = array<i64: 40, 16>}, {pipeline_mode = #tpu.pipeline_mode<synchronous>, transform_indices = @transform_3, window_bounds = array<i64: 1, 16>}, {transform_indices = @transform_4, window_bounds = array<i64: 8, 80>}, {transform_indices = @transform_5, window_bounds = array<i64: 8, 16>}]} {
    %c0 = arith.constant 0 : index
    %c0_0 = arith.constant 0 : index
    %0 = vector.load %arg5[%c0, %c0_0] : memref<8x80xf32, #tpu.memory_space<vmem>>, vector<8x80xf32>
    %c0_1 = arith.constant 0 : index
    %c0_2 = arith.constant 0 : index
    %1 = vector.load %arg1[%c0_1, %c0_2] : memref<80x40xf32, #tpu.memory_space<vmem>>, vector<80x40xf32>
    %cst = arith.constant dense<0.000000e+00> : vector<8x40xf32>
    %2 = tpu.matmul %0, %1, %cst {dimension_numbers = #tpu.dot_dimension_numbers<[1], [0], [0], [1], [0, 0, 1, 1], [], []>} : vector<8x80xf32>, vector<80x40xf32>, vector<8x40xf32> -> vector<8x40xf32>
    %c0_3 = arith.constant 0 : index
    %c0_4 = arith.constant 0 : index
    %3 = vector.load %arg2[%c0_3, %c0_4] : memref<1x40xf32, #tpu.memory_space<vmem>>, vector<1x40xf32>
    %4 = vector.broadcast %3 : vector<1x40xf32> to vector<8x40xf32>
    %5 = arith.addf %2, %4 : vector<8x40xf32>
    %cst_5 = arith.constant 0.000000e+00 : f32
    %6 = vector.broadcast %cst_5 : f32 to vector<8x40xf32>
    %7 = arith.maximumf %5, %6 : vector<8x40xf32>
    %c0_6 = arith.constant 0 : index
    %c0_7 = arith.constant 0 : index
    %8 = vector.load %arg3[%c0_6, %c0_7] : memref<40x16xf32, #tpu.memory_space<vmem>>, vector<40x16xf32>
    %cst_8 = arith.constant dense<0.000000e+00> : vector<8x16xf32>
    %9 = tpu.matmul %7, %8, %cst_8 {dimension_numbers = #tpu.dot_dimension_numbers<[1], [0], [0], [1], [0, 0, 1, 1], [], []>} : vector<8x40xf32>, vector<40x16xf32>, vector<8x16xf32> -> vector<8x16xf32>
    %c0_9 = arith.constant 0 : index
    %c0_10 = arith.constant 0 : index
    %10 = vector.load %arg4[%c0_9, %c0_10] : memref<1x16xf32, #tpu.memory_space<vmem>>, vector<1x16xf32>
    %11 = vector.broadcast %10 : vector<1x16xf32> to vector<8x16xf32>
    %12 = arith.addf %9, %11 : vector<8x16xf32>
    %c0_11 = arith.constant 0 : index
    %c0_12 = arith.constant 0 : index
    %13 = vector.load %arg6[%c0_11, %c0_12] : memref<8x16xf32, #tpu.memory_space<vmem>>, vector<8x16xf32>
    tpu.vector_store %arg6[%c0_11, %c0_12], %12 {strides = array<i32>} : memref<8x16xf32, #tpu.memory_space<vmem>>, vector<8x16xf32>,
    return
  }
  func.func @transform_0(%arg0: i32) -> (i32, i32) {
    %c0_i32 = arith.constant 0 : i32
    %c0_i32_0 = arith.constant 0 : i32
    %c0_i32_1 = arith.constant 0 : i32
    return %c0_i32, %c0_i32_0 : i32, i32
  }
  func.func @transform_1(%arg0: i32) -> (i32, i32) {
    %c0_i32 = arith.constant 0 : i32
    %c0_i32_0 = arith.constant 0 : i32
    %c0_i32_1 = arith.constant 0 : i32
    return %c0_i32, %c0_i32_0 : i32, i32
  }
  func.func @transform_2(%arg0: i32) -> (i32, i32) {
    %c0_i32 = arith.constant 0 : i32
    %c0_i32_0 = arith.constant 0 : i32
    %c0_i32_1 = arith.constant 0 : i32
    return %c0_i32, %c0_i32_0 : i32, i32
  }
  func.func @transform_3(%arg0: i32) -> (i32, i32) {
    %c0_i32 = arith.constant 0 : i32
    %c0_i32_0 = arith.constant 0 : i32
    %c0_i32_1 = arith.constant 0 : i32
    return %c0_i32, %c0_i32_0 : i32, i32
  }
  func.func @transform_4(%arg0: i32) -> (i32, i32) {
    %c0_i32 = arith.constant 0 : i32
    %c0_i32_0 = arith.constant 0 : i32
    return %arg0, %c0_i32 : i32, i32
  }
  func.func @transform_5(%arg0: i32) -> (i32, i32) {
    %c0_i32 = arith.constant 0 : i32
    %c0_i32_0 = arith.constant 0 : i32
    return %arg0, %c0_i32 : i32, i32
  }
}

</mosaic_0001>

<bundles_post_ra>
// kernel: tpu_custom_call.1
= control target key start
LH: loop header
LB: loop body
LE: loop exit
PB: predicated region body
PF: predicated region fallthrough
CT: control target
= control target key end

     0   :  { %v298_v1 = vmov 0.0   ;;  %vm299_vm0 = vmmov 0   ;;  %s388_s0 = inlined_call_operand.vmem [shape: f32[80,40], index: 0, kind: input, shape index: {}]   ;;  %s389_s1 = inlined_call_operand.vmem [shape: f32[1,40], index: 1, kind: input, shape index: {}]   ;;  %s390_s2 = inlined_call_operand.vmem [shape: f32[40,16], index: 2, kind: input, shape index: {}]   ;;  %s391_s3 = inlined_call_operand.vmem [shape: f32[1,16], index: 3, kind: input, shape index: {}]   ;;  %s392_s4 = inlined_call_operand.vmem [shape: f32[8,80], index: 4, kind: input, shape index: {}]   ;;  %s393_s5 = inlined_call_operand.hbm [shape: f32[8,16], index: 5, kind: output, shape index: {}]  }
   0x1   :  { %v31_v0 = vld [vmem:[%s388_s0 + $0x48] sm:$0xff]  ;;  %237 = vmatprep.subr.mxu0 %v298_v1  ;;  %v30_v2 = vld [vmem:[%s388_s0 + $0x40] sm:$0xff]  ;;  %257 = vmatprep.mubr.msk.f32.mxu0 %vm299_vm0, %v298_v1  ;;  %v29_v3 = vld [vmem:[%s388_s0 + $0x38] sm:$0xff] }
   0x2   :  { %238 = vmatpush3.msra.mxu0 %v31_v0  ;;  %260 = vmatprep.subr.mxu1 %v298_v1  ;;  %v118_v4 = vld [vmem:[%s390_s2 + $0x20] sm:$0xff]  ;;  %v117_v5 = vld [vmem:[%s390_s2 + $0x18] sm:$0xff] }
   0x3   :  { %239 = vmatprep.subr.mxu0 %v298_v1  ;;  %270 = vmatprep.mubr.msk.f32.mxu1 %vm299_vm0, %v298_v1 }
   0x4   :  { %240 = vmatpush3.msra.mxu0 %v30_v2  ;;  %261 = vmatpush3.msra.mxu1 %v118_v4 }
   0x5   :  { %10 = vsyncpa [#allocation3], 0  ;;  %241 = vmatprep.subr.mxu0 %v298_v1  ;;  %v28_v6 = vld [vmem:[%s388_s0 + $0x30] sm:$0xff]  ;;  %262 = vmatprep.subr.mxu1 %v298_v1  ;;  %v27_v7 = vld [vmem:[%s388_s0 + $0x28] sm:$0xff]  ;;  %vm39_vm1 = vcmask 654336   ;;  %vm126_vm2 = vcmask 326656  }
   0x6   :  { %242 = vmatpush3.msra.mxu0 %v29_v3  ;;  %263 = vmatpush3.msra.mxu1 %v117_v5  ;;  %v26_v8 = vld [vmem:[%s388_s0 + $0x20] sm:$0xff]  ;;  %v25_v9 = vld [vmem:[%s388_s0 + $0x18] sm:$0xff]  ;;  %v24_v10 = vld [vmem:[%s388_s0 + $0x10] sm:$0xff]  ;;  %s300_s27 = smov [#allocation2]   ;;  %vm200_vm3 = vcmask 130048  }
   0x7   :  { %243 = vmatprep.subr.mxu0 %v298_v1  ;;  %264 = vmatprep.subr.mxu1 %v298_v1  ;;  %v23_v11 = vld [vmem:[%s388_s0 + $0x8] sm:$0xff]  ;;  %v22_v12 = vld [vmem:[%s388_s0] sm:$0xff]  ;;  %v116_v14 = vld [vmem:[%s390_s2 + $0x10] sm:$0xff]  ;;  %s208_s28 = sshll.u32 %s300_s27, 4  ;;  %s209_s28 = int_to_ptr.vmem [resolvable:$true] %s208_s28 }
   0x8   :  { %244 = vmatpush3.msra.mxu0 %v28_v6  ;;  %v21_v13 = vld [vmem:[%s392_s4] sm:$0xff]  ;;  %265 = vmatpush3.msra.mxu1 %v116_v14  ;;  %v115_v15 = vld [vmem:[%s390_s2 + $0x8] sm:$0xff]  ;;  %p281_p1 = scmp.lt.s32.totalorder %s209_s28, %s209_s28 }
   0x9   :  { %245 = vmatprep.subr.mxu0 %v298_v1  ;;  %266 = vmatprep.subr.mxu1 %v298_v1  ;;  %v114_v16 = vld [vmem:[%s390_s2] sm:$0xff]  ;;  %s276_s2 = scalar_lea.vmem %s209_s28, 128 }
   0xa   :  { %246 = vmatpush3.msra.mxu0 %v27_v7  ;;  %267 = vmatpush3.msra.mxu1 %v115_v15  ;;  %v216_v17 = vld [vmem:[%s389_s1] ss:$0 sm:$0xff]  ;;  %p277_p0 = scmp.ne.s32.totalorder %s209_s28, %s276_s2  ;;  %p282_p2 = scmp.lt.s32.totalorder %s276_s2, %s276_s2 }
   0xb   :  { %247 = vmatprep.subr.mxu0 %v298_v1  ;;  %268 = vmatprep.subr.mxu1 %v298_v1  ;;  %v218_v22 = vld [vmem:[%s391_s3] ss:$0 sm:$0xff] }
   0xc   :  { %248 = vmatpush3.msra.mxu0 %v26_v8  ;;  %269 = vmatpush3.msra.mxu1 %v114_v16  ;;  %p283_p3 = por %p282_p2, %p281_p1 }
   0xd   :  { %249 = vmatprep.subr.mxu0 %v298_v1 }
   0xe   :  { %250 = vmatpush3.msra.mxu0 %v25_v9  ;;  %p284_p4 = pnand %p283_p3, %p277_p0 }
   0xf   :  { %251 = vmatprep.subr.mxu0 %v298_v1 }
  0x10   :  { %252 = vmatpush3.msra.mxu0 %v24_v10 }
  0x11   :  { %253 = vmatprep.subr.mxu0 %v298_v1 }
  0x12   :  { %254 = vmatpush3.msra.mxu0 %v23_v11 }
  0x13   :  { %255 = vmatprep.subr.mxu0 %v298_v1 }
  0x14   :  { %256 = vmatpush3.msra.mxu0 %v22_v12 }
  0x15   :  { %258 = vmatmul.mubr.msk.f32.vlgmr.msra.gmra.mxu0 %vm39_vm1, %v21_v13 }
  0xd5   :  { %v109_v18 = vpop.f32.mrf.mxu0 }
  0xd6   :  { %v110_v19 = vadd.f32 %v216_v17, %v109_v18 }
  0xd7   :  { %v259_v20 = vpop.f32.mrf.mxu0 }
  0xd8   :  { %v113_v21 = vmax.f32 %v110_v19, 0.0 }
  0xda   :  { %271 = vmatmul.mubr.msk.f32.vlgmr.msra.gmra.mxu1 %vm126_vm2, %v113_v21 }
 0x19a   :  { %v196_v23 = vpop.f32.mrf.mxu1 }
 0x19b   :  { %v197_v24 = vadd.f32 %v218_v22, %v196_v23 }
 0x19c   :  { %v272_v25 = vpop.f32.mrf.mxu1 }
 0x19d   :  { %201 = vst.msk [vmem:[#allocation2] sm:$0xff] %vm200_vm3, %v197_v24 }
 0x19e   :  { %287 = shalt.err (!%p284_p4)
}
 0x19f   :  { %211 = dma.vmem_to_hbm [thread:$0]  %s209_s28, 128, %s393_s5, [#allocation3]  }
 0x1a0   :  { %296 = dma.done.wait [#allocation3], 128  }
 0x1a1   :  { %297 = vsyncadd [#allocation3], 4294967168 }
 0x1a2   :  { %215 = vsyncpa [#allocation3], 1 }

</bundles_post_ra>
